<compile_context>
chip_gen: v7x
topology: tpu7x:2x2x1
jax: 0.10.0
libtpu: 0.0.40
codegen_flags: <defaults>
</compile_context>

<pallas_src>
import functools

import jax
import jax.numpy as jnp
import numpy as np
from jax.experimental import pallas as pl
from jax.experimental.pallas import tpu as pltpu


def _coattention_kernel(v_ref, q_ref, wv_ref, bv_ref, wq_ref, bq_ref,
                        v_out_ref, q_out_ref, *, compute_dtype):
    Bb, Fr, Dv = v_ref.shape
    _, Lq, Dq = q_ref.shape

    v = v_ref[...]          # (Bb, Fr, Dv) -- also the residual
    q = q_ref[...]          # (Bb, Lq, Dq) -- also the residual

    # Merge batch into the matmul M-dim (free view: Fr/Lq are multiples of 8).
    v2 = v.reshape(Bb * Fr, Dv).astype(compute_dtype)
    q2 = q.reshape(Bb * Lq, Dq).astype(compute_dtype)

    # FCNet projections: ReLU(x @ W + b).
    # TODO(synk): FCNet's nn.Dropout layers are identity (inference) and the
    # weight_norm reparameterization is folded into the effective (in, out)
    # weight passed by the wrapper.
    v_fc = jnp.maximum(
        jnp.dot(v2, wv_ref[...], preferred_element_type=jnp.float32)
        + bv_ref[...], 0.0)                                   # (Bb*Fr, H) f32
    q_fc = jnp.maximum(
        jnp.dot(q2, wq_ref[...], preferred_element_type=jnp.float32)
        + bq_ref[...], 0.0)                                   # (Bb*Lq, H) f32

    H = v_fc.shape[-1]
    v_fc3 = v_fc.reshape(Bb, Fr, H)
    q_fc3 = q_fc.reshape(Bb, Lq, H)

    # Only the needed slices of aff = v_fc @ q_fc^T:
    #   aff[:, :, 0] -> (Bb, Fr, 1)   (column 0: v_fc . q_fc[:, 0])
    #   aff[:, 0, :] -> (Bb, Lq, 1)   (row 0, kept as a column: q_fc . v_fc[:, 0])
    # VPU multiply + lane reduction; no transposes, no narrow MXU calls.
    aff_v = jnp.sum(v_fc3 * q_fc3[:, 0:1, :], axis=-1, keepdims=True)   # (Bb, Fr, 1)
    aff_q = jnp.sum(q_fc3 * v_fc3[:, 0:1, :], axis=-1, keepdims=True)   # (Bb, Lq, 1)

    def softmax_rows(x):  # softmax along axis=1 of a (Bb, L, 1) stack of columns
        m = jnp.max(x, axis=1, keepdims=True)
        e = jnp.exp(x - m)
        # Exact divide: the denominator is (Bb, 1, 1), so an approx reciprocal
        # buys zero cycles but costs ~1e-3 relative accuracy.
        return e / jnp.sum(e, axis=1, keepdims=True)

    v_att = softmax_rows(aff_v)   # == softmax(aff, dim=1)[:, :, 0:1]
    q_att = softmax_rows(aff_q)   # == softmax(aff, dim=2)[:, 0, :, None]

    # Residual attention:  x * att + x  ==  x * (1 + att)
    v_out_ref[...] = v * (1.0 + v_att)
    q_out_ref[...] = q * (1.0 + q_att)


def co_attention(v, q, params, *, batch_block=None, compute_dtype=jnp.float32):
    """Returns (v_attend, q_attend) matching CoAttention.forward (eval mode).

    batch_block: batch elements per grid step (default: whole batch in one step).
    compute_dtype: dtype of the FC-matmul operands (use jnp.bfloat16 at
        production sizes; accumulation stays f32 either way).
    """
    B, Fr, Dv = v.shape
    _, Lq, Dq = q.shape
    wv, bv, wq, bq = params
    H = wv.shape[1]

    if batch_block is None:
        batch_block = B                      # fold the whole batch: one grid step
    assert B % batch_block == 0, "batch_block must divide B"
    nb = B // batch_block

    # Pre-cast weights in the wrapper (halves weight DMA when bf16 is used);
    # biases stay f32 since they are added to the f32 accumulator.
    wv = wv.astype(compute_dtype)
    wq = wq.astype(compute_dtype)

    # Explicit VMEM budget with headroom (don't rely on the scoped default,
    # especially on v7x where physical VMEM is 64 MiB).
    elt = 4
    est_bytes = elt * (
        2 * (batch_block * Fr * Dv + batch_block * Lq * Dq)      # in + out blocks
        + Dv * H + Dq * H + 2 * H                                # weights + biases
        + batch_block * Fr * H + batch_block * Lq * H)           # fc intermediates
    vmem_limit = int(min(max(8 * est_bytes, 4 * 1024 * 1024), 32 * 1024 * 1024))

    kernel = functools.partial(_coattention_kernel, compute_dtype=compute_dtype)

    v_out, q_out = pl.pallas_call(
        kernel,
        out_shape=(
            jax.ShapeDtypeStruct((B, Fr, Dv), v.dtype),
            jax.ShapeDtypeStruct((B, Lq, Dq), q.dtype),
        ),
        grid=(nb,),
        in_specs=[
            pl.BlockSpec((batch_block, Fr, Dv), lambda b: (b, 0, 0)),
            pl.BlockSpec((batch_block, Lq, Dq), lambda b: (b, 0, 0)),
            pl.BlockSpec((Dv, H), lambda b: (0, 0)),   # Wv (constant across grid)
            pl.BlockSpec((1, H), lambda b: (0, 0)),    # bv
            pl.BlockSpec((Dq, H), lambda b: (0, 0)),   # Wq
            pl.BlockSpec((1, H), lambda b: (0, 0)),    # bq
        ],
        out_specs=(
            pl.BlockSpec((batch_block, Fr, Dv), lambda b: (b, 0, 0)),
            pl.BlockSpec((batch_block, Lq, Dq), lambda b: (b, 0, 0)),
        ),
        # Outputs reuse the v/q HBM buffers (same shape/dtype).
        input_output_aliases={0: 0, 1: 1},
        compiler_params=pltpu.CompilerParams(
            # Single folded-batch step by default; flip to "parallel" only when
            # batch_block < B and per-step work is large enough to hide a
            # cross-TensorCore split on v7x.
            dimension_semantics=("arbitrary",),
            vmem_limit_bytes=vmem_limit,
        ),
    )(v, q, wv, bv, wq, bq)
    return v_out, q_out


def _reference(v, q, params):
    """Pure-JAX literal translation of the PyTorch forward (dropout = identity)."""
    wv, bv, wq, bq = params
    v_fc = jnp.maximum(v @ wv + bv[0], 0.0)
    q_fc = jnp.maximum(q @ wq + bq[0], 0.0)
    aff = jnp.einsum("bfh,bqh->bfq", v_fc, q_fc)
    v_att = jax.nn.softmax(aff, axis=1)[:, :, 0][..., None]
    q_att = jax.nn.softmax(aff, axis=2)[:, 0, :][..., None]
    return v * v_att + v, q * q_att + q


def init_params(key, v_dim, q_dim, hid_dim):
    k = jax.random.split(key, 4)
    # Effective (post weight_norm) weights stored pre-transposed: (in, out).
    wv = (jax.random.normal(k[0], (v_dim, hid_dim)) *
          np.sqrt(2.0 / (v_dim + hid_dim))).astype(jnp.float32)
    wq = (jax.random.normal(k[1], (q_dim, hid_dim)) *
          np.sqrt(2.0 / (q_dim + hid_dim))).astype(jnp.float32)
    bv = (jax.random.uniform(k[2], (1, hid_dim), minval=-1.0, maxval=1.0) /
          np.sqrt(v_dim)).astype(jnp.float32)
    bq = (jax.random.uniform(k[3], (1, hid_dim), minval=-1.0, maxval=1.0) /
          np.sqrt(q_dim)).astype(jnp.float32)
    return wv, bv, wq, bq


if __name__ == "__main__":
    B, frame_num, q_len = 2, 16, 8
    v_dim, q_dim, hid_dim = 64, 32, 32

    key = jax.random.PRNGKey(0)
    kv, kq, kp = jax.random.split(key, 3)
    v = jax.random.normal(kv, (B, frame_num, v_dim), jnp.float32)
    q = jax.random.normal(kq, (B, q_len, q_dim), jnp.float32)
    params = init_params(kp, v_dim, q_dim, hid_dim)

    # Reference computed first (outputs alias the v/q buffers inside the call).
    ref_v, ref_q = _reference(v, q, params)

    v_attend, q_attend = co_attention(v, q, params)
    v_attend = jax.block_until_ready(v_attend)
    q_attend = jax.block_until_ready(q_attend)

    np.testing.assert_allclose(np.asarray(v_attend), np.asarray(ref_v), atol=1e-3, rtol=1e-3)
    np.testing.assert_allclose(np.asarray(q_attend), np.asarray(ref_q), atol=1e-3, rtol=1e-3)

    print("KERNEL_OK")
</pallas_src>

<mosaic_0001>
module attributes {stable_mosaic.version = 11 : i64} {
  func.func @_coattention_kernel(%arg0: i32, %arg1: memref<2x16x64xf32, #tpu.memory_space<vmem>>, %arg2: memref<2x8x32xf32, #tpu.memory_space<vmem>>, %arg3: memref<64x32xf32, #tpu.memory_space<vmem>>, %arg4: memref<1x32xf32, #tpu.memory_space<vmem>>, %arg5: memref<32x32xf32, #tpu.memory_space<vmem>>, %arg6: memref<1x32xf32, #tpu.memory_space<vmem>>, %arg7: memref<2x16x64xf32, #tpu.memory_space<vmem>>, %arg8: memref<2x8x32xf32, #tpu.memory_space<vmem>>) attributes {dimension_semantics = [#tpu.dimension_semantics<arbitrary>], iteration_bounds = array<i64: 1>, scalar_prefetch = 0 : i64, scratch_operands = 0 : i64, tpu.core_type = #tpu.core_type<tc>, window_params = [{transform_indices = @transform_0, window_bounds = array<i64: 2, 16, 64>}, {transform_indices = @transform_1, window_bounds = array<i64: 2, 8, 32>}, {pipeline_mode = #tpu.pipeline_mode<synchronous>, transform_indices = @transform_2, window_bounds = array<i64: 64, 32>}, {pipeline_mode = #tpu.pipeline_mode<synchronous>, transform_indices = @transform_3, window_bounds = array<i64: 1, 32>}, {pipeline_mode = #tpu.pipeline_mode<synchronous>, transform_indices = @transform_4, window_bounds = array<i64: 32, 32>}, {pipeline_mode = #tpu.pipeline_mode<synchronous>, transform_indices = @transform_5, window_bounds = array<i64: 1, 32>}, {transform_indices = @transform_6, window_bounds = array<i64: 2, 16, 64>}, {transform_indices = @transform_7, window_bounds = array<i64: 2, 8, 32>}]} {
    %c0 = arith.constant 0 : index
    %c0_0 = arith.constant 0 : index
    %c0_1 = arith.constant 0 : index
    %0 = vector.load %arg1[%c0, %c0_0, %c0_1] : memref<2x16x64xf32, #tpu.memory_space<vmem>>, vector<2x16x64xf32>
    %c0_2 = arith.constant 0 : index
    %c0_3 = arith.constant 0 : index
    %c0_4 = arith.constant 0 : index
    %1 = vector.load %arg2[%c0_2, %c0_3, %c0_4] : memref<2x8x32xf32, #tpu.memory_space<vmem>>, vector<2x8x32xf32>
    %2 = vector.shape_cast %0 : vector<2x16x64xf32> to vector<32x64xf32>
    %3 = vector.shape_cast %1 : vector<2x8x32xf32> to vector<16x32xf32>
    %c0_5 = arith.constant 0 : index
    %c0_6 = arith.constant 0 : index
    %4 = vector.load %arg3[%c0_5, %c0_6] : memref<64x32xf32, #tpu.memory_space<vmem>>, vector<64x32xf32>
    %cst = arith.constant dense<0.000000e+00> : vector<32x32xf32>
    %5 = tpu.matmul %2, %4, %cst {dimension_numbers = #tpu.dot_dimension_numbers<[1], [0], [0], [1], [0, 0, 1, 1], [], []>} : vector<32x64xf32>, vector<64x32xf32>, vector<32x32xf32> -> vector<32x32xf32>
    %c0_7 = arith.constant 0 : index
    %c0_8 = arith.constant 0 : index
    %6 = vector.load %arg4[%c0_7, %c0_8] : memref<1x32xf32, #tpu.memory_space<vmem>>, vector<1x32xf32>
    %7 = vector.broadcast %6 : vector<1x32xf32> to vector<32x32xf32>
    %8 = arith.addf %5, %7 : vector<32x32xf32>
    %cst_9 = arith.constant 0.000000e+00 : f32
    %9 = vector.broadcast %cst_9 : f32 to vector<32x32xf32>
    %10 = arith.maximumf %8, %9 : vector<32x32xf32>
    %c0_10 = arith.constant 0 : index
    %c0_11 = arith.constant 0 : index
    %11 = vector.load %arg5[%c0_10, %c0_11] : memref<32x32xf32, #tpu.memory_space<vmem>>, vector<32x32xf32>
    %cst_12 = arith.constant dense<0.000000e+00> : vector<16x32xf32>
    %12 = tpu.matmul %3, %11, %cst_12 {dimension_numbers = #tpu.dot_dimension_numbers<[1], [0], [0], [1], [0, 0, 1, 1], [], []>} : vector<16x32xf32>, vector<32x32xf32>, vector<16x32xf32> -> vector<16x32xf32>
    %c0_13 = arith.constant 0 : index
    %c0_14 = arith.constant 0 : index
    %13 = vector.load %arg6[%c0_13, %c0_14] : memref<1x32xf32, #tpu.memory_space<vmem>>, vector<1x32xf32>
    %14 = vector.broadcast %13 : vector<1x32xf32> to vector<16x32xf32>
    %15 = arith.addf %12, %14 : vector<16x32xf32>
    %cst_15 = arith.constant 0.000000e+00 : f32
    %16 = vector.broadcast %cst_15 : f32 to vector<16x32xf32>
    %17 = arith.maximumf %15, %16 : vector<16x32xf32>
    %18 = vector.shape_cast %10 : vector<32x32xf32> to vector<2x16x32xf32>
    %19 = vector.shape_cast %17 : vector<16x32xf32> to vector<2x8x32xf32>
    %20 = vector.extract_strided_slice %19 {offsets = [0, 0, 0], sizes = [2, 1, 32], strides = [1, 1, 1]} : vector<2x8x32xf32> to vector<2x1x32xf32>
    %21 = vector.broadcast %20 : vector<2x1x32xf32> to vector<2x16x32xf32>
    %22 = arith.mulf %18, %21 : vector<2x16x32xf32>
    %cst_16 = arith.constant dense<0.000000e+00> : vector<2x16xf32>
    %23 = vector.multi_reduction <add>, %22, %cst_16 [2] : vector<2x16x32xf32> to vector<2x16xf32>
    %24 = vector.shape_cast %23 : vector<2x16xf32> to vector<2x16x1xf32>
    %25 = vector.extract_strided_slice %18 {offsets = [0, 0, 0], sizes = [2, 1, 32], strides = [1, 1, 1]} : vector<2x16x32xf32> to vector<2x1x32xf32>
    %26 = vector.broadcast %25 : vector<2x1x32xf32> to vector<2x8x32xf32>
    %27 = arith.mulf %19, %26 : vector<2x8x32xf32>
    %cst_17 = arith.constant dense<0.000000e+00> : vector<2x8xf32>
    %28 = vector.multi_reduction <add>, %27, %cst_17 [2] : vector<2x8x32xf32> to vector<2x8xf32>
    %29 = vector.shape_cast %28 : vector<2x8xf32> to vector<2x8x1xf32>
    %cst_18 = arith.constant dense<0xFF800000> : vector<2x1xf32>
    %30 = vector.multi_reduction <maximumf>, %24, %cst_18 [1] : vector<2x16x1xf32> to vector<2x1xf32>
    %31 = vector.shape_cast %30 : vector<2x1xf32> to vector<2x1x1xf32>
    %32 = vector.broadcast %31 : vector<2x1x1xf32> to vector<2x16x1xf32>
    %33 = arith.subf %24, %32 : vector<2x16x1xf32>
    %34 = math.exp %33 : vector<2x16x1xf32>
    %cst_19 = arith.constant dense<0.000000e+00> : vector<2x1xf32>
    %35 = vector.multi_reduction <add>, %34, %cst_19 [1] : vector<2x16x1xf32> to vector<2x1xf32>
    %36 = vector.shape_cast %35 : vector<2x1xf32> to vector<2x1x1xf32>
    %37 = vector.broadcast %36 : vector<2x1x1xf32> to vector<2x16x1xf32>
    %38 = arith.divf %34, %37 : vector<2x16x1xf32>
    %cst_20 = arith.constant dense<0xFF800000> : vector<2x1xf32>
    %39 = vector.multi_reduction <maximumf>, %29, %cst_20 [1] : vector<2x8x1xf32> to vector<2x1xf32>
    %40 = vector.shape_cast %39 : vector<2x1xf32> to vector<2x1x1xf32>
    %41 = vector.broadcast %40 : vector<2x1x1xf32> to vector<2x8x1xf32>
    %42 = arith.subf %29, %41 : vector<2x8x1xf32>
    %43 = math.exp %42 : vector<2x8x1xf32>
    %cst_21 = arith.constant dense<0.000000e+00> : vector<2x1xf32>
    %44 = vector.multi_reduction <add>, %43, %cst_21 [1] : vector<2x8x1xf32> to vector<2x1xf32>
    %45 = vector.shape_cast %44 : vector<2x1xf32> to vector<2x1x1xf32>
    %46 = vector.broadcast %45 : vector<2x1x1xf32> to vector<2x8x1xf32>
    %47 = arith.divf %43, %46 : vector<2x8x1xf32>
    %cst_22 = arith.constant 1.000000e+00 : f32
    %48 = vector.broadcast %cst_22 : f32 to vector<2x16x1xf32>
    %49 = arith.addf %48, %38 : vector<2x16x1xf32>
    %50 = vector.broadcast %49 : vector<2x16x1xf32> to vector<2x16x64xf32>
    %51 = arith.mulf %0, %50 : vector<2x16x64xf32>
    %c0_23 = arith.constant 0 : index
    %c0_24 = arith.constant 0 : index
    %c0_25 = arith.constant 0 : index
    %52 = vector.load %arg7[%c0_23, %c0_24, %c0_25] : memref<2x16x64xf32, #tpu.memory_space<vmem>>, vector<2x16x64xf32>
    tpu.vector_store %arg7[%c0_23, %c0_24, %c0_25], %51 {strides = array<i32>} : memref<2x16x64xf32, #tpu.memory_space<vmem>>, vector<2x16x64xf32>,
    %cst_26 = arith.constant 1.000000e+00 : f32
    %53 = vector.broadcast %cst_26 : f32 to vector<2x8x1xf32>
    %54 = arith.addf %53, %47 : vector<2x8x1xf32>
    %55 = vector.broadcast %54 : vector<2x8x1xf32> to vector<2x8x32xf32>
    %56 = arith.mulf %1, %55 : vector<2x8x32xf32>
    %c0_27 = arith.constant 0 : index
    %c0_28 = arith.constant 0 : index
    %c0_29 = arith.constant 0 : index
    %57 = vector.load %arg8[%c0_27, %c0_28, %c0_29] : memref<2x8x32xf32, #tpu.memory_space<vmem>>, vector<2x8x32xf32>
    tpu.vector_store %arg8[%c0_27, %c0_28, %c0_29], %56 {strides = array<i32>} : memref<2x8x32xf32, #tpu.memory_space<vmem>>, vector<2x8x32xf32>,
    return
  }
  func.func @transform_0(%arg0: i32) -> (i32, i32, i32) {
    %c0_i32 = arith.constant 0 : i32
    %c0_i32_0 = arith.constant 0 : i32
    %c0_i32_1 = arith.constant 0 : i32
    return %arg0, %c0_i32, %c0_i32_0 : i32, i32, i32
  }
  func.func @transform_1(%arg0: i32) -> (i32, i32, i32) {
    %c0_i32 = arith.constant 0 : i32
    %c0_i32_0 = arith.constant 0 : i32
    %c0_i32_1 = arith.constant 0 : i32
    return %arg0, %c0_i32, %c0_i32_0 : i32, i32, i32
  }
  func.func @transform_2(%arg0: i32) -> (i32, i32) {
    %c0_i32 = arith.constant 0 : i32
    %c0_i32_0 = arith.constant 0 : i32
    %c0_i32_1 = arith.constant 0 : i32
    return %c0_i32, %c0_i32_0 : i32, i32
  }
  func.func @transform_3(%arg0: i32) -> (i32, i32) {
    %c0_i32 = arith.constant 0 : i32
    %c0_i32_0 = arith.constant 0 : i32
    %c0_i32_1 = arith.constant 0 : i32
    return %c0_i32, %c0_i32_0 : i32, i32
  }
  func.func @transform_4(%arg0: i32) -> (i32, i32) {
    %c0_i32 = arith.constant 0 : i32
    %c0_i32_0 = arith.constant 0 : i32
    %c0_i32_1 = arith.constant 0 : i32
    return %c0_i32, %c0_i32_0 : i32, i32
  }
  func.func @transform_5(%arg0: i32) -> (i32, i32) {
    %c0_i32 = arith.constant 0 : i32
    %c0_i32_0 = arith.constant 0 : i32
    %c0_i32_1 = arith.constant 0 : i32
    return %c0_i32, %c0_i32_0 : i32, i32
  }
  func.func @transform_6(%arg0: i32) -> (i32, i32, i32) {
    %c0_i32 = arith.constant 0 : i32
    %c0_i32_0 = arith.constant 0 : i32
    %c0_i32_1 = arith.constant 0 : i32
    return %arg0, %c0_i32, %c0_i32_0 : i32, i32, i32
  }
  func.func @transform_7(%arg0: i32) -> (i32, i32, i32) {
    %c0_i32 = arith.constant 0 : i32
    %c0_i32_0 = arith.constant 0 : i32
    %c0_i32_1 = arith.constant 0 : i32
    return %arg0, %c0_i32, %c0_i32_0 : i32, i32, i32
  }
}

</mosaic_0001>

<bundles_post_ra>
// kernel: tpu_custom_call.1
= control target key start
LH: loop header
LB: loop body
LE: loop exit
PB: predicated region body
PF: predicated region fallthrough
CT: control target
= control target key end

     0   :  { %13 = vsyncpa [#allocation3], 0  ;;  %s847_s0 = inlined_call_operand.hbm [shape: f32[2,16,64], index: 0, kind: input, shape index: {}, may-alias: {0,6}]   ;;  %s848_s1 = inlined_call_operand.hbm [shape: f32[2,8,32], index: 1, kind: input, shape index: {}, may-alias: {1,7}]   ;;  %s849_s2 = inlined_call_operand.vmem [shape: f32[64,32], index: 2, kind: input, shape index: {}]   ;;  %s850_s3 = inlined_call_operand.vmem [shape: f32[1,32], index: 3, kind: input, shape index: {}]   ;;  %s851_s4 = inlined_call_operand.vmem [shape: f32[32,32], index: 4, kind: input, shape index: {}]   ;;  %s852_s5 = inlined_call_operand.vmem [shape: f32[1,32], index: 5, kind: input, shape index: {}]   ;;  %s853_s6 = inlined_call_operand.hbm [shape: f32[2,16,64], index: 6, kind: output, shape index: {0}, may-alias: {0,6}]   ;;  %s854_s7 = inlined_call_operand.hbm [shape: f32[2,8,32], index: 7, kind: output, shape index: {1}, may-alias: {1,7}]  }
   0x1   :  { %14 = vsyncpa [#allocation6], 0 }
   0x2   :  { %15 = vsyncpa [#allocation4], 0 }
   0x3   :  { %16 = vsyncpa [#allocation9], 0  ;;  %s650_s24 = smov [#allocation2]   ;;  %s554_s28 = scalar_lea.hbm %s847_s0, 512 }
   0x4   :  { %s22_s25 = sshll.u32 %s650_s24, 4  ;;  %p555_p0 = scmp.ne.s32.totalorder %s847_s0, %s554_s28  ;;  %s23_s25 = int_to_ptr.vmem [resolvable:$true] %s22_s25 }
   0x5   :  { %p558_p1 = scmp.lt.u32.totalorder %s554_s28, %s847_s0 }
   0x7   :  { %p560_p2 = pnand %p558_p1, %p555_p0 }
   0x9   :  { %563 = shalt.err (!%p560_p2)
}
   0xa   :  { %s564_s10 = scalar_lea.vmem %s23_s25, 512  ;;  %p569_p4 = scmp.lt.s32.totalorder %s23_s25, %s23_s25 }
   0xb   :  { %p565_p3 = scmp.ne.s32.totalorder %s23_s25, %s564_s10  ;;  %p570_p5 = scmp.lt.s32.totalorder %s564_s10, %s564_s10 }
   0xd   :  { %p571_p6 = por %p570_p5, %p569_p4 }
   0xf   :  { %p572_p7 = pnand %p571_p6, %p565_p3 }
  0x11   :  { %575 = shalt.err (!%p572_p7)
}
  0x12   :  { %s651_s11 = smov 128   ;;  %s652_s12 = smov 8  }
  0x13   :  { %28 = dma.hbm_to_vmem [thread:$0]  %s847_s0, 512, %s23_s25, [#allocation3], %s651_s11, %s651_s11, %s652_s12  }
  0x14   :  { %s653_s15 = smov [#allocation5]   ;;  %s576_s19 = scalar_lea.hbm %s848_s1, 256 }
  0x15   :  { %s34_s16 = sshll.u32 %s653_s15, 4  ;;  %p577_p8 = scmp.ne.s32.totalorder %s848_s1, %s576_s19  ;;  %s35_s16 = int_to_ptr.vmem [resolvable:$true] %s34_s16 }
  0x16   :  { %p580_p9 = scmp.lt.u32.totalorder %s576_s19, %s848_s1 }
  0x18   :  { %p582_p10 = pnand %p580_p9, %p577_p8 }
  0x1a   :  { %585 = shalt.err (!%p582_p10)
}
  0x1b   :  { %s586_s24 = scalar_lea.vmem %s35_s16, 256  ;;  %p591_p12 = scmp.lt.s32.totalorder %s35_s16, %s35_s16 }
  0x1c   :  { %p587_p11 = scmp.ne.s32.totalorder %s35_s16, %s586_s24  ;;  %p592_p13 = scmp.lt.s32.totalorder %s586_s24, %s586_s24 }
  0x1e   :  { %p593_p0 = por %p592_p13, %p591_p12 }
  0x20   :  { %p594_p1 = pnand %p593_p0, %p587_p11 }
  0x22   :  { %597 = shalt.err (!%p594_p1)
}
  0x23   :  { %40 = dma.hbm_to_vmem [thread:$0]  %s848_s1, 256, %s35_s16, [#allocation6], %s651_s11, %s651_s11, %s652_s12  }
  0x24   :  { %642 = dma.done.wait [#allocation3], 512  }
  0x25   :  { %643 = vsyncadd [#allocation3], 4294966784 }
  0x26   :  { %644 = dma.done.wait [#allocation6], 256  }
  0x27   :  { %645 = vsyncadd [#allocation6], 4294967040  ;;  %v61_v0 = vld [vmem:[%s849_s2] sm:$0xff]  ;;  %v62_v1 = vld [vmem:[%s849_s2 + $0x8] sm:$0xff]  ;;  %vm189_vm0 = vcmask 261120   ;;  %vm76_vm1 = vcmask 523264   ;;  %v273_v24 = vlaneseq }
  0x28   :  { %v63_v2 = vld [vmem:[%s849_s2 + $0x10] sm:$0xff]  ;;  %v504_v3 = vpack.c.bf16 %v62_v1, %v61_v0  ;;  %v64_v4 = vld [vmem:[%s849_s2 + $0x18] sm:$0xff]  ;;  %v178_v5 = vld [vmem:[%s851_s4] sm:$0xff]  ;;  %s655_s29 = smov [#allocation8]  }
  0x29   :  { %v179_v6 = vld [vmem:[%s851_s4 + $0x8] sm:$0xff]  ;;  %v508_v7 = vpack.c.bf16 %v64_v4, %v63_v2  ;;  %v65_v9 = vld [vmem:[%s849_s2 + $0x20] sm:$0xff]  ;;  %v180_v11 = vld [vmem:[%s851_s4 + $0x10] sm:$0xff]  ;;  %v274_v27 = vshrl.u32 %v273_v24, 7  ;;  %s428_s30 = sshll.u32 %s655_s29, 4  ;;  %s807_s30 = int_to_ptr.vmem [resolvable:$true] %s428_s30 }
  0x2a   :  { %v520_v8 = vpack.c.bf16 %v179_v6, %v178_v5  ;;  %v66_v10 = vld [vmem:[%s849_s2 + $0x28] sm:$0xff]  ;;  %505 = vmatprep.subr.bf16.mxu0 %v504_v3  ;;  %v181_v12 = vld [vmem:[%s851_s4 + $0x18] sm:$0xff]  ;;  %v756_v14 = vld [vmem:[#allocation5] sm:$0xff] }
  0x2b   :  { %507 = vmatpush3.bf16.msra.mxu0 %v504_v3  ;;  %v524_v13 = vpack.c.bf16 %v181_v12, %v180_v11  ;;  %v758_v15 = vld [vmem:[#allocation2] sm:$0xff]  ;;  %v512_v16 = vpack.c.bf16 %v66_v10, %v65_v9  ;;  %v67_v17 = vld [vmem:[%s849_s2 + $0x30] sm:$0xff]  ;;  %v68_v18 = vld [vmem:[%s849_s2 + $0x38] sm:$0xff]  ;;  %501 = vmatprep.mubr.msk.f32.mxu1 %vm189_vm0, %v756_v14  ;;  %v275_v31 = vsub.s32 0, %v274_v27 }
  0x2c   :  { %521 = vmatprep.subr.bf16.mxu1 %v520_v8  ;;  %509 = vmatprep.subr.bf16.mxu0 %v508_v7  ;;  %v516_v19 = vpack.c.bf16 %v68_v18, %v67_v17  ;;  %v770_v20 = vld [vmem:[#allocation5 + $0x8] sm:$0xff]  ;;  %v776_v22 = vld [vmem:[#allocation2 + $0x10] sm:$0xff]  ;;  %v782_v23 = vld [vmem:[#allocation2 + $0x18] sm:$0xff] }
  0x2d   :  { %523 = vmatpush3.bf16.msra.mxu1 %v520_v8  ;;  %487 = vmatprep.mubr.msk.f32.mxu0 %vm76_vm1, %v758_v15  ;;  %v774_v21 = vld [vmem:[#allocation2 + $0x8] sm:$0xff]  ;;  %v450_v25 = vld [vmem:[%s852_s5] ss:$0 sm:$0xff] }
  0x2e   :  { %525 = vmatprep.subr.bf16.mxu1 %v524_v13  ;;  %v445_v33 = vld [vmem:[%s850_s3] ss:$0 sm:$0xff]  ;;  %s654_s3 = smov [#allocation7]  }
  0x2f   :  { %511 = vmatpush3.bf16.msra.mxu0 %v508_v7  ;;  %s416_s5 = sshll.u32 %s654_s3, 4  ;;  %s417_s5 = int_to_ptr.vmem [resolvable:$true] %s416_s5 }
  0x30   :  { %513 = vmatprep.subr.bf16.mxu0 %v512_v16  ;;  %s598_s8 = scalar_lea.vmem %s417_s5, 512  ;;  %p603_p3 = scmp.lt.s32.totalorder %s417_s5, %s417_s5 }
  0x31   :  { %527 = vmatpush3.bf16.msra.mxu1 %v524_v13  ;;  %p599_p2 = scmp.ne.s32.totalorder %s417_s5, %s598_s8  ;;  %p604_p4 = scmp.lt.s32.totalorder %s598_s8, %s598_s8 }
  0x33   :  { %515 = vmatpush3.bf16.msra.mxu0 %v512_v16  ;;  %p605_p5 = por %p604_p4, %p603_p3 }
  0x34   :  { %502 = vmatmul.mubr.msk.f32.vlgmr.msra.gmra.mrb[0].mxu1 %vm189_vm0, %v770_v20  ;;  %517 = vmatprep.subr.bf16.mxu0 %v516_v19 }
  0x35   :  { %p606_p6 = pnand %p605_p5, %p599_p2 }
  0x37   :  { %519 = vmatpush3.bf16.msra.mxu0 %v516_v19 }
  0x3a   :  { %488 = vmatmul.mubr.msk.f32.vlgmr.msra.gmra.mrb[0].mxu0 %vm76_vm1, %v774_v21 }
  0x3b   :  { %490 = vmatprep.mubr.msk.f32.mxu0 %vm76_vm1, %v776_v22 }
  0x3e   :  { %491 = vmatmul.mubr.msk.f32.gmra.mrb[2].mxu0 %vm76_vm1, %v782_v23 }
 0x107   :  { %v503_v26 = vpop.f32.mrb[0].mxu1 }
 0x108   :  { %v262_v28 = vpop.f32.mrb[1].mxu1  ;;  %v268_v30 = vadd.f32 %v503_v26, %v450_v25 }
 0x109   :  { %v263_v29 = vadd.f32 %v450_v25, %v262_v28 }
 0x10a   :  { %v272_v35 = vmax.f32 %v268_v30, 0.0 }
 0x10b   :  { %v271_v32 = vmax.f32 %v263_v29, 0.0 }
 0x10c   :  { %v280_v43 = vrot.slane %v272_v35, %v275_v31 }
 0x10d   :  { %v489_v34 = vpop.f32.mrb[0].mxu0  ;;  %v276_v36 = vrot.slane %v271_v32, %v275_v31 }
 0x10e   :  { %v161_v37 = vadd.f32 %v489_v34, %v445_v33  ;;  %v155_v38 = vpop.f32.mrb[1].mxu0 }
 0x10f   :  { %v156_v39 = vadd.f32 %v445_v33, %v155_v38 }
 0x110   :  { %v175_v40 = vmax.f32 %v161_v37, 0.0 }
 0x111   :  { %v174_v41 = vmax.f32 %v156_v39, 0.0  ;;  %v492_v42 = vpop.f32.mrb[2].mxu0 }
 0x112   :  { %v171_v44 = vadd.f32 %v492_v42, %v445_v33  ;;  %v165_v45 = vpop.f32.mrb[3].mxu0  ;;  %v282_v46 = vmul.f32 %v276_v36, %v175_v40 }
 0x113   :  { %v300_v47 = vrot.slane %v174_v41, %v275_v31  ;;  %v166_v48 = vadd.f32 %v445_v33, %v165_v45  ;;  %v281_v49 = vmul.f32 %v276_v36, %v174_v41 }
 0x114   :  { %v177_v50 = vmax.f32 %v171_v44, 0.0  ;;  %v288_v51 = vsel %vm189_vm0, %v282_v46, 0.0 }
 0x115   :  { %v176_v52 = vmax.f32 %v166_v48, 0.0  ;;  %289 = vadd.xlane.f32.xlu0 %v288_v51  ;;  %v305_v53 = vmul.f32 %v300_v47, %v271_v32  ;;  %v285_v58 = vsel %vm189_vm0, %v281_v49, 0.0 }
 0x116   :  { %v284_v54 = vmul.f32 %v280_v43, %v177_v50 }
 0x117   :  { %v304_v55 = vrot.slane %v176_v52, %v275_v31  ;;  %v283_v56 = vmul.f32 %v280_v43, %v176_v52  ;;  %v307_v61 = vsel %vm189_vm0, %v305_v53, 0.0 }
 0x118   :  { %v294_v57 = vsel %vm189_vm0, %v284_v54, 0.0 }
 0x119   :  { %295 = vadd.xlane.f32.xlu1 %v294_v57  ;;  %286 = vadd.xlane.f32.xlu0 %v285_v58  ;;  %v306_v59 = vmul.f32 %v304_v55, %v272_v35  ;;  %v291_v60 = vsel %vm189_vm0, %v283_v56, 0.0 }
 0x11b   :  { %v310_v62 = vsel %vm189_vm0, %v306_v59, 0.0 }
 0x11d   :  { %292 = vadd.xlane.f32.xlu1 %v291_v60  ;;  %308 = vadd.xlane.f32.xlu0 %v307_v61 }
 0x121   :  { %311 = vadd.xlane.f32.xlu1 %v310_v62 }
 0x1a2   :  { %v290_v63 = vpop.xlane.xlu0 %289 }
 0x1a6   :  { %v296_v0 = vpop.xlane.xlu1 %295  ;;  %v287_v1 = vpop.xlane.xlu0 %286 }
 0x1a7   :  { %v313_v2 = vmax.f32 %v287_v1, %v290_v63 }
 0x1a9   :  { %v314_v3 = vrot.slane %v313_v2, 4 }
 0x1aa   :  { %v293_v4 = vpop.xlane.xlu1 %292  ;;  %v309_v5 = vpop.xlane.xlu0 %308 }
 0x1ab   :  { %v315_v6 = vmax.f32 %v313_v2, %v314_v3  ;;  %v320_v7 = vmax.f32 %v293_v4, %v296_v0  ;;  %v359_v8 = vrot.slane %v309_v5, 4 }
 0x1ad   :  { %v316_v9 = vrot.slane %v315_v6, 2  ;;  %v321_v10 = vrot.slane %v320_v7, 4  ;;  %v360_v11 = vmax.f32 %v309_v5, %v359_v8 }
 0x1ae   :  { %v312_v12 = vpop.xlane.xlu1 %311 }
 0x1af   :  { %v317_v13 = vmax.f32 %v315_v6, %v316_v9  ;;  %v322_v16 = vmax.f32 %v320_v7, %v321_v10  ;;  %v361_v17 = vrot.slane %v360_v11, 2  ;;  %v365_v18 = vrot.slane %v312_v12, 4 }
 0x1b1   :  { %v318_v19 = vrot.slane %v317_v13, 1  ;;  %v323_v24 = vrot.slane %v322_v16, 2  ;;  %v362_v25 = vmax.f32 %v360_v11, %v361_v17  ;;  %v366_v26 = vmax.f32 %v312_v12, %v365_v18 }
 0x1b3   :  { %v319_v27 = vmax.f32 %v317_v13, %v318_v19  ;;  %v324_v28 = vmax.f32 %v322_v16, %v323_v24  ;;  %v363_v29 = vrot.slane %v362_v25, 1  ;;  %v367_v30 = vrot.slane %v366_v26, 2 }
 0x1b5   :  { %v327_v31 = vsub.f32 %v287_v1, %v319_v27  ;;  %v328_v32 = vsub.f32 %v290_v63, %v319_v27  ;;  %v325_v33 = vrot.slane %v324_v28, 1  ;;  %v364_v34 = vmax.f32 %v362_v25, %v363_v29 }
 0x1b6   :  { %v368_v35 = vmax.f32 %v366_v26, %v367_v30 }
 0x1b7   :  { %v331_v36 = vmul.f32 1.442695, %v327_v31  ;;  %v333_v37 = vmul.f32 1.442695, %v328_v32  ;;  %v326_v38 = vmax.f32 %v324_v28, %v325_v33  ;;  %v371_v39 = vsub.f32 %v309_v5, %v364_v34 }
 0x1b8   :  { %v369_v40 = vrot.slane %v368_v35, 1 }
 0x1b9   :  { %534 = vpow2.f32 %v331_v36  ;;  %v329_v41 = vsub.f32 %v293_v4, %v326_v38  ;;  %v330_v42 = vsub.f32 %v296_v0, %v326_v38  ;;  %v373_v43 = vmul.f32 1.442695, %v371_v39 }
 0x1ba   :  { %536 = vpow2.f32 %v333_v37  ;;  %v370_v44 = vmax.f32 %v368_v35, %v369_v40 }
 0x1bb   :  { %v335_v45 = vmul.f32 1.442695, %v329_v41  ;;  %v337_v46 = vmul.f32 1.442695, %v330_v42  ;;  %538 = vpow2.f32 %v373_v43 }
 0x1bc   :  { %v372_v47 = vsub.f32 %v312_v12, %v370_v44 }
 0x1bd   :  { %540 = vpow2.f32 %v335_v45 }
 0x1be   :  { %542 = vpow2.f32 %v337_v46  ;;  %v375_v48 = vmul.f32 1.442695, %v372_v47 }
 0x1c0   :  { %544 = vpow2.f32 %v375_v48 }
 0x1c3   :  { %v535_v49 = vpop.eup %534 }
 0x1c4   :  { %v537_v50 = vpop.eup %536 }
 0x1c5   :  { %v539_v51 = vpop.eup %538  ;;  %v339_v52 = vadd.f32 %v537_v50, %v535_v49 }
 0x1c6   :  { %v377_v53 = vrot.slane %v539_v51, 4 }
 0x1c7   :  { %v541_v54 = vpop.eup %540  ;;  %v340_v55 = vrot.slane %v339_v52, 4 }
 0x1c8   :  { %v543_v56 = vpop.eup %542  ;;  %v378_v57 = vadd.f32 %v539_v51, %v377_v53 }
 0x1c9   :  { %v341_v58 = vadd.f32 %v340_v55, %v339_v52  ;;  %v346_v59 = vadd.f32 %v543_v56, %v541_v54 }
 0x1ca   :  { %v545_v60 = vpop.eup %544  ;;  %v379_v61 = vrot.slane %v378_v57, 2 }
 0x1cb   :  { %v342_v62 = vrot.slane %v341_v58, 2  ;;  %v347_v63 = vrot.slane %v346_v59, 4  ;;  %v383_v0 = vrot.slane %v545_v60, 4 }
 0x1cc   :  { %v380_v1 = vadd.f32 %v379_v61, %v378_v57 }
 0x1cd   :  { %v343_v2 = vadd.f32 %v342_v62, %v341_v58  ;;  %v348_v3 = vadd.f32 %v347_v63, %v346_v59  ;;  %v384_v4 = vadd.f32 %v545_v60, %v383_v0 }
 0x1ce   :  { %v381_v5 = vrot.slane %v380_v1, 1 }
 0x1cf   :  { %v344_v6 = vrot.slane %v343_v2, 1  ;;  %v349_v7 = vrot.slane %v348_v3, 2  ;;  %v385_v8 = vrot.slane %v384_v4, 2 }
 0x1d0   :  { %v382_v9 = vadd.f32 %v381_v5, %v380_v1 }
 0x1d1   :  { %v345_v10 = vadd.f32 %v344_v6, %v343_v2  ;;  %v350_v11 = vadd.f32 %v349_v7, %v348_v3  ;;  %v386_v12 = vadd.f32 %v385_v8, %v384_v4 }
 0x1d2   :  { %546 = vrcp.f32 %v382_v9 }
 0x1d3   :  { %548 = vrcp.f32 %v345_v10  ;;  %v351_v13 = vrot.slane %v350_v11, 1  ;;  %v387_v16 = vrot.slane %v386_v12, 1 }
 0x1d5   :  { %v352_v17 = vadd.f32 %v351_v13, %v350_v11  ;;  %v388_v18 = vadd.f32 %v387_v16, %v386_v12 }
 0x1d7   :  { %550 = vrcp.f32 %v352_v17 }
 0x1d8   :  { %552 = vrcp.f32 %v388_v18 }
 0x1dc   :  { %v547_v19 = vpop.eup %546 }
 0x1dd   :  { %v549_v24 = vpop.eup %548  ;;  %v390_v25 = vmul.f32 %v547_v19, %v539_v51 }
 0x1de   :  { %v354_v26 = vmul.f32 %v549_v24, %v535_v49  ;;  %v355_v27 = vmul.f32 %v549_v24, %v537_v50 }
 0x1df   :  { %v405_v28 = vadd.f32 1.0, %v390_v25 }
 0x1e0   :  { %v393_v29 = vadd.f32 1.0, %v354_v26  ;;  %v394_v30 = vadd.f32 1.0, %v355_v27 }
 0x1e1   :  { %v551_v31 = vpop.eup %550  ;;  %v407_v32 = vmul.f32 %v405_v28, %v756_v14 }
 0x1e2   :  { %v553_v33 = vpop.eup %552  ;;  %v357_v34 = vmul.f32 %v551_v31, %v541_v54  ;;  %v358_v35 = vmul.f32 %v551_v31, %v543_v56  ;;  %v397_v36 = vmul.f32 %v393_v29, %v758_v15  ;;  %v398_v37 = vmul.f32 %v394_v30, %v774_v21 }
 0x1e3   :  { %v392_v38 = vmul.f32 %v553_v33, %v545_v60  ;;  %409 = vst.msk [vmem:[#allocation8] sm:$0xff] %vm189_vm0, %v407_v32 }
 0x1e4   :  { %v395_v39 = vadd.f32 1.0, %v357_v34  ;;  %v396_v40 = vadd.f32 1.0, %v358_v35  ;;  %401 = vst.msk [vmem:[#allocation7] sm:$0xff] %vm76_vm1, %v397_v36  ;;  %402 = vst.msk [vmem:[#allocation7 + $0x8] sm:$0xff] %vm76_vm1, %v398_v37 }
 0x1e5   :  { %v406_v14 = vadd.f32 1.0, %v392_v38 }
 0x1e6   :  { %v399_v41 = vmul.f32 %v395_v39, %v776_v22  ;;  %v400_v15 = vmul.f32 %v396_v40, %v782_v23 }
 0x1e7   :  { %v408_v21 = vmul.f32 %v406_v14, %v770_v20 }
 0x1e8   :  { %403 = vst.msk [vmem:[#allocation7 + $0x10] sm:$0xff] %vm76_vm1, %v399_v41  ;;  %404 = vst.msk [vmem:[#allocation7 + $0x18] sm:$0xff] %vm76_vm1, %v400_v15 }
 0x1e9   :  { %609 = shalt.err (!%p606_p6)
}
 0x1ea   :  { %s610_s1 = scalar_lea.hbm %s853_s6, 512 }
 0x1eb   :  { %p611_p7 = scmp.ne.s32.totalorder %s853_s6, %s610_s1  ;;  %p614_p8 = scmp.lt.u32.totalorder %s610_s1, %s853_s6 }
 0x1ed   :  { %p616_p9 = pnand %p614_p8, %p611_p7 }
 0x1ef   :  { %619 = shalt.err (!%p616_p9)
}
 0x1f0   :  { %422 = dma.vmem_to_hbm [thread:$0]  %s417_s5, 512, %s853_s6, [#allocation4], %s651_s11, %s651_s11, %s652_s12   ;;  %410 = vst.msk [vmem:[#allocation8 + $0x8] sm:$0xff] %vm189_vm0, %v408_v21 }
 0x1f1   :  { %s620_s19 = scalar_lea.vmem %s807_s30, 256  ;;  %p625_p11 = scmp.lt.s32.totalorder %s807_s30, %s807_s30 }
 0x1f2   :  { %p621_p10 = scmp.ne.s32.totalorder %s807_s30, %s620_s19  ;;  %p626_p12 = scmp.lt.s32.totalorder %s620_s19, %s620_s19 }
 0x1f4   :  { %p627_p13 = por %p626_p12, %p625_p11 }
 0x1f6   :  { %p628_p0 = pnand %p627_p13, %p621_p10 }
 0x1f8   :  { %631 = shalt.err (!%p628_p0)
}
 0x1f9   :  { %s632_s22 = scalar_lea.hbm %s854_s7, 256 }
 0x1fa   :  { %p633_p1 = scmp.ne.s32.totalorder %s854_s7, %s632_s22  ;;  %p636_p2 = scmp.lt.u32.totalorder %s632_s22, %s854_s7 }
 0x1fc   :  { %p638_p3 = pnand %p636_p2, %p633_p1 }
 0x1fe   :  { %641 = shalt.err (!%p638_p3)
}
 0x1ff   :  { %434 = dma.vmem_to_hbm [thread:$0]  %s807_s30, 256, %s854_s7, [#allocation9], %s651_s11, %s651_s11, %s652_s12  }
 0x200   :  { %646 = dma.done.wait [#allocation4], 512  }
 0x201   :  { %647 = vsyncadd [#allocation4], 4294966784 }
 0x202   :  { %648 = dma.done.wait [#allocation9], 256  }
 0x203   :  { %649 = vsyncadd [#allocation9], 4294967040 }
 0x204   :  { %441 = vsyncpa [#allocation3], 1 }
 0x205   :  { %442 = vsyncpa [#allocation6], 1 }
 0x206   :  { %443 = vsyncpa [#allocation4], 1 }
 0x207   :  { %444 = vsyncpa [#allocation9], 1 }

</bundles_post_ra>
